<compile_context>
chip_gen: v6e
topology: v6e:2x2x1
jax: 0.10.0
libtpu: 0.0.40
codegen_flags: <defaults>
</compile_context>

<pallas_src>
import jax
import jax.numpy as jnp
from jax.experimental import pallas as pl
from jax.experimental.pallas import tpu as pltpu


def _round_up(x, m):
    return ((x + m - 1) // m) * m


def _policy_kernel(s_ref, w1_ref, b1_ref, w2_ref, b2_ref,
                   wsg_ref, bsg_ref, wstop_ref, bstop_ref,
                   stop_ref, sg_ref):
    # Layer 1: Linear -> ReLU (bf16 MXU operands, f32 accumulate + epilogue)
    h = jnp.dot(s_ref[...], w1_ref[...], preferred_element_type=jnp.float32)
    h = jnp.maximum(h + b1_ref[...], 0.0)
    # Layer 2: Linear -> ReLU
    h = jnp.dot(h.astype(jnp.bfloat16), w2_ref[...],
                preferred_element_type=jnp.float32)
    h = jnp.maximum(h + b2_ref[...], 0.0)
    # Stop logit = (layer3 @ outlayer)[:, 0], computed as a VPU mul + lane
    # reduce (cheaper/safer than an N=1 MXU matmul); f32 throughout.
    stop = jnp.sum(h * wstop_ref[...], axis=-1, keepdims=True) + bstop_ref[...]
    stop_ref[...] = stop.astype(stop_ref.dtype)
    # Space-group logits = (layer3 @ outlayer)[:, 1:231]: one fused MXU matmul.
    sg = jnp.dot(h.astype(jnp.bfloat16), wsg_ref[...],
                 preferred_element_type=jnp.float32)
    sg_ref[...] = (sg + bsg_ref[...]).astype(sg_ref.dtype)


def prepare_params(params):
    """One-time host-side parameter prep:
       - fuse backbone layer-3 with outlayer (no nonlinearity between them)
       - split the fused weight by column: stop (col 0) vs space-group (1..230)
       - cast MXU operands to bf16; biases and the stop row stay f32."""
    w1, b1, w2, b2, w3, b3, wo, bo = params
    wf = w3.astype(jnp.float32) @ wo.astype(jnp.float32)          # [hidden, P]
    bf = b3.astype(jnp.float32) @ wo.astype(jnp.float32) + bo     # [1, P]
    wstop = wf[:, 0:1].T                                          # [1, hidden] f32
    bstop = bf[:, 0:1]                                            # [1, 1]      f32
    wsg = wf[:, 1:].astype(jnp.bfloat16)                          # [hidden, 230]
    bsg = bf[:, 1:]                                               # [1, 230]    f32
    return (w1.astype(jnp.bfloat16), b1.astype(jnp.float32),
            w2.astype(jnp.bfloat16), b2.astype(jnp.float32),
            wsg, bsg, wstop.astype(jnp.float32), bstop)


def _jnp_forward(s, fused_params, out_dtype):
    """Small-batch fast path: plain dense math, same fused parameters."""
    w1, b1, w2, b2, wsg, bsg, wstop, bstop = fused_params
    x = s.astype(jnp.bfloat16)
    h = jnp.maximum(jnp.dot(x, w1, preferred_element_type=jnp.float32) + b1, 0.0)
    h = jnp.maximum(jnp.dot(h.astype(jnp.bfloat16), w2,
                            preferred_element_type=jnp.float32) + b2, 0.0)
    stop = jnp.sum(h * wstop, axis=-1) + bstop[0, 0]
    sg = jnp.dot(h.astype(jnp.bfloat16), wsg,
                 preferred_element_type=jnp.float32) + bsg
    return [stop.astype(out_dtype), sg.astype(out_dtype)]


def bw_spacegroup_policy_forward(s, fused_params, *, tile_b=1024,
                                 out_dtype=jnp.bfloat16,
                                 small_batch_threshold=1024,
                                 force_pallas=False):
    """Returns [out_stop (B,), out_sg (B, 230)] exactly like the PyTorch forward()."""
    w1, b1, w2, b2, wsg, bsg, wstop, bstop = fused_params
    B, dim = s.shape
    if B < small_batch_threshold and not force_pallas:
        # Pallas pipeline setup dominates at tiny B; XLA's fused dense path wins.
        return _jnp_forward(s, fused_params, out_dtype)

    hidden = w1.shape[1]
    n_sg = wsg.shape[1]

    # Batch tile: multiple of 8 sublanes; capped at ceil(B/2) so the parallel
    # grid has >=2 steps (v7x: both TensorCores used) and large B pipelines.
    tb = max(8, min(tile_b, _round_up(-(-B // 2), 8)))
    b_pad = _round_up(B, tb)

    s_in = s.astype(jnp.bfloat16)            # halve input DMA / VMEM
    if b_pad != B:
        s_in = jnp.pad(s_in, ((0, b_pad - B), (0, 0)))

    def const(shape):
        # Constant index_map -> weights/biases stay VMEM-resident across steps.
        return pl.BlockSpec(shape, lambda i: (0, 0))

    stop, sg = pl.pallas_call(
        _policy_kernel,
        out_shape=(jax.ShapeDtypeStruct((b_pad, 1), out_dtype),
                   jax.ShapeDtypeStruct((b_pad, n_sg), out_dtype)),
        grid=(b_pad // tb,),
        in_specs=[
            pl.BlockSpec((tb, dim), lambda i: (i, 0)),     # batch-tiled input
            const((dim, hidden)), const((1, hidden)),
            const((hidden, hidden)), const((1, hidden)),
            const((hidden, n_sg)), const((1, n_sg)),
            const((1, hidden)), const((1, 1)),
        ],
        out_specs=(pl.BlockSpec((tb, 1), lambda i: (i, 0)),
                   pl.BlockSpec((tb, n_sg), lambda i: (i, 0))),
        compiler_params=pltpu.CompilerParams(
            dimension_semantics=("parallel",)),            # shard batch on 2 TCs (v7x)
    )(s_in, w1, b1, w2, b2, wsg, bsg, wstop, bstop)

    out_stop = stop[:B, 0]                   # tiny (4B-2B per row) squeeze
    out_sg = sg[:B] if b_pad != B else sg    # no copy when B is tile-aligned
    return [out_stop, out_sg]


def init_params(key, dim=4, hidden_dim=32, output_dim=32, prob_output=231):
    ks = jax.random.split(key, 8)

    def lin(kw, kb, fan_in, fan_out):
        bound = 1.0 / jnp.sqrt(fan_in)
        w = jax.random.uniform(kw, (fan_in, fan_out), jnp.float32, -bound, bound)
        b = jax.random.uniform(kb, (1, fan_out), jnp.float32, -bound, bound)
        return w, b

    w1, b1 = lin(ks[0], ks[1], dim, hidden_dim)
    w2, b2 = lin(ks[2], ks[3], hidden_dim, hidden_dim)
    w3, b3 = lin(ks[4], ks[5], hidden_dim, output_dim)
    wo, bo = lin(ks[6], ks[7], output_dim, prob_output)
    return (w1, b1, w2, b2, w3, b3, wo, bo)


if __name__ == "__main__":
    key = jax.random.PRNGKey(0)
    k_params, k_s = jax.random.split(key)

    # Small shapes consistent with the module: batch=8, dim=4, hidden=32,
    # output_dim=32, prob_output=231.
    B, DIM = 8, 4
    params = init_params(k_params, dim=DIM, hidden_dim=32,
                         output_dim=32, prob_output=231)
    s = jax.random.normal(k_s, (B, DIM), jnp.float32)
    sub = None  # unused by forward(), mirrored here for fidelity

    fused_params = prepare_params(params)
    # force_pallas=True so the Pallas kernel itself is exercised at this tiny B
    # (the default dispatch would take the small-batch jnp fast path).
    out_stop, out_sg = bw_spacegroup_policy_forward(s, fused_params,
                                                    force_pallas=True)
    jax.block_until_ready(out_stop)
    jax.block_until_ready(out_sg)

    assert out_stop.shape == (B,)
    assert out_sg.shape == (B, 230)

    # Sanity check against a plain-JAX f32 reference of the ORIGINAL (unfused)
    # math; tolerance accounts for bf16 MXU operands + bf16 output store.
    def ref(s, p):
        w1, b1, w2, b2, w3, b3, wo, bo = p
        h = jnp.maximum(s @ w1 + b1, 0.0)
        h = jnp.maximum(h @ w2 + b2, 0.0)
        f = h @ w3 + b3
        o = f @ wo + bo
        return o[..., 0], o[..., 1:]

    r_stop, r_sg = ref(s, params)
    assert jnp.allclose(out_stop.astype(jnp.float32), r_stop, atol=5e-2, rtol=5e-2)
    assert jnp.allclose(out_sg.astype(jnp.float32), r_sg, atol=5e-2, rtol=5e-2)

    # Also exercise the default small-batch dispatch once (jnp fast path).
    fs_stop, fs_sg = bw_spacegroup_policy_forward(s, fused_params)
    jax.block_until_ready(fs_sg)
    assert fs_stop.shape == (B,) and fs_sg.shape == (B, 230)

    print("KERNEL_OK")
</pallas_src>

<mosaic_0001>
module attributes {stable_mosaic.version = 11 : i64} {
  func.func @_policy_kernel(%arg0: i32, %arg1: memref<8x4xbf16, #tpu.memory_space<vmem>>, %arg2: memref<4x32xbf16, #tpu.memory_space<vmem>>, %arg3: memref<1x32xf32, #tpu.memory_space<vmem>>, %arg4: memref<32x32xbf16, #tpu.memory_space<vmem>>, %arg5: memref<1x32xf32, #tpu.memory_space<vmem>>, %arg6: memref<32x230xbf16, #tpu.memory_space<vmem>>, %arg7: memref<1x230xf32, #tpu.memory_space<vmem>>, %arg8: memref<1x32xf32, #tpu.memory_space<vmem>>, %arg9: memref<1x1xf32, #tpu.memory_space<vmem>>, %arg10: memref<8x1xbf16, #tpu.memory_space<vmem>>, %arg11: memref<8x230xbf16, #tpu.memory_space<vmem>>) attributes {dimension_semantics = [#tpu.dimension_semantics<parallel>], iteration_bounds = array<i64: 1>, scalar_prefetch = 0 : i64, scratch_operands = 0 : i64, tpu.core_type = #tpu.core_type<tc>, window_params = [{transform_indices = @transform_0, window_bounds = array<i64: 8, 4>}, {pipeline_mode = #tpu.pipeline_mode<synchronous>, transform_indices = @transform_1, window_bounds = array<i64: 4, 32>}, {pipeline_mode = #tpu.pipeline_mode<synchronous>, transform_indices = @transform_2, window_bounds = array<i64: 1, 32>}, {pipeline_mode = #tpu.pipeline_mode<synchronous>, transform_indices = @transform_3, window_bounds = array<i64: 32, 32>}, {pipeline_mode = #tpu.pipeline_mode<synchronous>, transform_indices = @transform_4, window_bounds = array<i64: 1, 32>}, {pipeline_mode = #tpu.pipeline_mode<synchronous>, transform_indices = @transform_5, window_bounds = array<i64: 32, 230>}, {pipeline_mode = #tpu.pipeline_mode<synchronous>, transform_indices = @transform_6, window_bounds = array<i64: 1, 230>}, {pipeline_mode = #tpu.pipeline_mode<synchronous>, transform_indices = @transform_7, window_bounds = array<i64: 1, 32>}, {pipeline_mode = #tpu.pipeline_mode<synchronous>, transform_indices = @transform_8, window_bounds = array<i64: 1, 1>}, {transform_indices = @transform_9, window_bounds = array<i64: 8, 1>}, {transform_indices = @transform_10, window_bounds = array<i64: 8, 230>}]} {
    %c0 = arith.constant 0 : index
    %c0_0 = arith.constant 0 : index
    %0 = vector.load %arg1[%c0, %c0_0] : memref<8x4xbf16, #tpu.memory_space<vmem>>, vector<8x4xbf16>
    %c0_1 = arith.constant 0 : index
    %c0_2 = arith.constant 0 : index
    %1 = vector.load %arg2[%c0_1, %c0_2] : memref<4x32xbf16, #tpu.memory_space<vmem>>, vector<4x32xbf16>
    %cst = arith.constant dense<0.000000e+00> : vector<8x32xf32>
    %2 = tpu.matmul %0, %1, %cst {dimension_numbers = #tpu.dot_dimension_numbers<[1], [0], [0], [1], [0, 0, 1, 1], [], []>} : vector<8x4xbf16>, vector<4x32xbf16>, vector<8x32xf32> -> vector<8x32xf32>
    %c0_3 = arith.constant 0 : index
    %c0_4 = arith.constant 0 : index
    %3 = vector.load %arg3[%c0_3, %c0_4] : memref<1x32xf32, #tpu.memory_space<vmem>>, vector<1x32xf32>
    %4 = vector.broadcast %3 : vector<1x32xf32> to vector<8x32xf32>
    %5 = arith.addf %2, %4 : vector<8x32xf32>
    %cst_5 = arith.constant 0.000000e+00 : f32
    %6 = vector.broadcast %cst_5 : f32 to vector<8x32xf32>
    %7 = arith.maximumf %5, %6 : vector<8x32xf32>
    %8 = arith.truncf %7 : vector<8x32xf32> to vector<8x32xbf16>
    %c0_6 = arith.constant 0 : index
    %c0_7 = arith.constant 0 : index
    %9 = vector.load %arg4[%c0_6, %c0_7] : memref<32x32xbf16, #tpu.memory_space<vmem>>, vector<32x32xbf16>
    %cst_8 = arith.constant dense<0.000000e+00> : vector<8x32xf32>
    %10 = tpu.matmul %8, %9, %cst_8 {dimension_numbers = #tpu.dot_dimension_numbers<[1], [0], [0], [1], [0, 0, 1, 1], [], []>} : vector<8x32xbf16>, vector<32x32xbf16>, vector<8x32xf32> -> vector<8x32xf32>
    %c0_9 = arith.constant 0 : index
    %c0_10 = arith.constant 0 : index
    %11 = vector.load %arg5[%c0_9, %c0_10] : memref<1x32xf32, #tpu.memory_space<vmem>>, vector<1x32xf32>
    %12 = vector.broadcast %11 : vector<1x32xf32> to vector<8x32xf32>
    %13 = arith.addf %10, %12 : vector<8x32xf32>
    %cst_11 = arith.constant 0.000000e+00 : f32
    %14 = vector.broadcast %cst_11 : f32 to vector<8x32xf32>
    %15 = arith.maximumf %13, %14 : vector<8x32xf32>
    %c0_12 = arith.constant 0 : index
    %c0_13 = arith.constant 0 : index
    %16 = vector.load %arg8[%c0_12, %c0_13] : memref<1x32xf32, #tpu.memory_space<vmem>>, vector<1x32xf32>
    %17 = vector.broadcast %16 : vector<1x32xf32> to vector<8x32xf32>
    %18 = arith.mulf %15, %17 : vector<8x32xf32>
    %cst_14 = arith.constant dense<0.000000e+00> : vector<8xf32>
    %19 = vector.multi_reduction <add>, %18, %cst_14 [1] : vector<8x32xf32> to vector<8xf32>
    %20 = vector.shape_cast %19 : vector<8xf32> to vector<8x1xf32>
    %c0_15 = arith.constant 0 : index
    %c0_16 = arith.constant 0 : index
    %21 = vector.load %arg9[%c0_15, %c0_16] : memref<1x1xf32, #tpu.memory_space<vmem>>, vector<1x1xf32>
    %22 = vector.broadcast %21 : vector<1x1xf32> to vector<8x1xf32>
    %23 = arith.addf %20, %22 : vector<8x1xf32>
    %24 = arith.truncf %23 : vector<8x1xf32> to vector<8x1xbf16>
    %c0_17 = arith.constant 0 : index
    %c0_18 = arith.constant 0 : index
    %25 = vector.load %arg10[%c0_17, %c0_18] : memref<8x1xbf16, #tpu.memory_space<vmem>>, vector<8x1xbf16>
    tpu.vector_store %arg10[%c0_17, %c0_18], %24 {strides = array<i32>} : memref<8x1xbf16, #tpu.memory_space<vmem>>, vector<8x1xbf16>,
    %26 = arith.truncf %15 : vector<8x32xf32> to vector<8x32xbf16>
    %c0_19 = arith.constant 0 : index
    %c0_20 = arith.constant 0 : index
    %27 = vector.load %arg6[%c0_19, %c0_20] : memref<32x230xbf16, #tpu.memory_space<vmem>>, vector<32x230xbf16>
    %cst_21 = arith.constant dense<0.000000e+00> : vector<8x230xf32>
    %28 = tpu.matmul %26, %27, %cst_21 {dimension_numbers = #tpu.dot_dimension_numbers<[1], [0], [0], [1], [0, 0, 1, 1], [], []>} : vector<8x32xbf16>, vector<32x230xbf16>, vector<8x230xf32> -> vector<8x230xf32>
    %c0_22 = arith.constant 0 : index
    %c0_23 = arith.constant 0 : index
    %29 = vector.load %arg7[%c0_22, %c0_23] : memref<1x230xf32, #tpu.memory_space<vmem>>, vector<1x230xf32>
    %30 = vector.broadcast %29 : vector<1x230xf32> to vector<8x230xf32>
    %31 = arith.addf %28, %30 : vector<8x230xf32>
    %32 = arith.truncf %31 : vector<8x230xf32> to vector<8x230xbf16>
    %c0_24 = arith.constant 0 : index
    %c0_25 = arith.constant 0 : index
    %33 = vector.load %arg11[%c0_24, %c0_25] : memref<8x230xbf16, #tpu.memory_space<vmem>>, vector<8x230xbf16>
    tpu.vector_store %arg11[%c0_24, %c0_25], %32 {strides = array<i32>} : memref<8x230xbf16, #tpu.memory_space<vmem>>, vector<8x230xbf16>,
    return
  }
  func.func @transform_0(%arg0: i32) -> (i32, i32) {
    %c0_i32 = arith.constant 0 : i32
    %c0_i32_0 = arith.constant 0 : i32
    return %arg0, %c0_i32 : i32, i32
  }
  func.func @transform_1(%arg0: i32) -> (i32, i32) {
    %c0_i32 = arith.constant 0 : i32
    %c0_i32_0 = arith.constant 0 : i32
    %c0_i32_1 = arith.constant 0 : i32
    return %c0_i32, %c0_i32_0 : i32, i32
  }
  func.func @transform_2(%arg0: i32) -> (i32, i32) {
    %c0_i32 = arith.constant 0 : i32
    %c0_i32_0 = arith.constant 0 : i32
    %c0_i32_1 = arith.constant 0 : i32
    return %c0_i32, %c0_i32_0 : i32, i32
  }
  func.func @transform_3(%arg0: i32) -> (i32, i32) {
    %c0_i32 = arith.constant 0 : i32
    %c0_i32_0 = arith.constant 0 : i32
    %c0_i32_1 = arith.constant 0 : i32
    return %c0_i32, %c0_i32_0 : i32, i32
  }
  func.func @transform_4(%arg0: i32) -> (i32, i32) {
    %c0_i32 = arith.constant 0 : i32
    %c0_i32_0 = arith.constant 0 : i32
    %c0_i32_1 = arith.constant 0 : i32
    return %c0_i32, %c0_i32_0 : i32, i32
  }
  func.func @transform_5(%arg0: i32) -> (i32, i32) {
    %c0_i32 = arith.constant 0 : i32
    %c0_i32_0 = arith.constant 0 : i32
    %c0_i32_1 = arith.constant 0 : i32
    return %c0_i32, %c0_i32_0 : i32, i32
  }
  func.func @transform_6(%arg0: i32) -> (i32, i32) {
    %c0_i32 = arith.constant 0 : i32
    %c0_i32_0 = arith.constant 0 : i32
    %c0_i32_1 = arith.constant 0 : i32
    return %c0_i32, %c0_i32_0 : i32, i32
  }
  func.func @transform_7(%arg0: i32) -> (i32, i32) {
    %c0_i32 = arith.constant 0 : i32
    %c0_i32_0 = arith.constant 0 : i32
    %c0_i32_1 = arith.constant 0 : i32
    return %c0_i32, %c0_i32_0 : i32, i32
  }
  func.func @transform_8(%arg0: i32) -> (i32, i32) {
    %c0_i32 = arith.constant 0 : i32
    %c0_i32_0 = arith.constant 0 : i32
    %c0_i32_1 = arith.constant 0 : i32
    return %c0_i32, %c0_i32_0 : i32, i32
  }
  func.func @transform_9(%arg0: i32) -> (i32, i32) {
    %c0_i32 = arith.constant 0 : i32
    %c0_i32_0 = arith.constant 0 : i32
    return %arg0, %c0_i32 : i32, i32
  }
  func.func @transform_10(%arg0: i32) -> (i32, i32) {
    %c0_i32 = arith.constant 0 : i32
    %c0_i32_0 = arith.constant 0 : i32
    return %arg0, %c0_i32 : i32, i32
  }
}

</mosaic_0001>

<bundles_post_ra>
// kernel: tpu_custom_call.1
= control target key start
LH: loop header
LB: loop body
LE: loop exit
PB: predicated region body
PF: predicated region fallthrough
CT: control target
= control target key end

     0   :  { %s547_s0 = inlined_call_operand.vmem [shape: bf16[8,4], index: 0, kind: input, shape index: {}]   ;;  %s548_s1 = inlined_call_operand.vmem [shape: bf16[4,32], index: 1, kind: input, shape index: {}]   ;;  %s549_s2 = inlined_call_operand.vmem [shape: f32[1,32], index: 2, kind: input, shape index: {}]   ;;  %s550_s3 = inlined_call_operand.hbm [shape: bf16[32,32], index: 3, kind: input, shape index: {}]   ;;  %s551_s4 = inlined_call_operand.vmem [shape: f32[1,32], index: 4, kind: input, shape index: {}]   ;;  %s552_s5 = inlined_call_operand.hbm [shape: bf16[32,230], index: 5, kind: input, shape index: {}]   ;;  %s553_s6 = inlined_call_operand.vmem [shape: f32[1,230], index: 6, kind: input, shape index: {}]   ;;  %s554_s7 = inlined_call_operand.vmem [shape: f32[1,32], index: 7, kind: input, shape index: {}]   ;;  %s555_s8 = inlined_call_operand.<no memory space> [shape: f32[1,1], index: 8, kind: input, shape index: {}]   ;;  %s556_s9 = inlined_call_operand.vmem [shape: bf16[8,1], index: 9, kind: output, shape index: {0}]   ;;  %s557_s10 = inlined_call_operand.hbm [shape: bf16[8,230], index: 10, kind: output, shape index: {1}]  }
   0x1   :  { %v16_v0 = vstv %s555_s8 }
   0x2   :  { %17 = vst [vmem:[#allocation2] sm:$0x1] %v16_v0 }
   0x3   :  { %18 = vsyncpa [#allocation4], 0 }
   0x4   :  { %19 = vsyncpa [#allocation7], 0 }
   0x5   :  { %20 = vsyncpa [#allocation5], 0  ;;  %s446_s15 = smov [#allocation3]  }
   0x6   :  { %s32_s16 = sshll.u32 %s446_s15, 4  ;;  %s33_s16 = int_to_ptr.vmem [resolvable:$true] %s32_s16 }
   0x7   :  { %s388_s17 = scalar_lea.vmem %s33_s16, 256  ;;  %p393_p1 = scmp.lt.s32.totalorder %s33_s16, %s33_s16 }
   0x8   :  { %p389_p0 = scmp.ne.s32.totalorder %s33_s16, %s388_s17  ;;  %p394_p2 = scmp.lt.s32.totalorder %s388_s17, %s388_s17 }
   0xa   :  { %p395_p3 = por %p394_p2, %p393_p1 }
   0xc   :  { %p396_p4 = pnand %p395_p3, %p389_p0 }
   0xe   :  { %399 = shalt.err (!%p396_p4)
}
   0xf   :  { %s447_s18 = smov 64   ;;  %s448_s19 = smov 4  }
  0x10   :  { %38 = dma.hbm_to_vmem [thread:$0]  %s550_s3, 256, %s33_s16, [#allocation4], %s447_s18, %s447_s18, %s448_s19  }
  0x11   :  { %s449_s8 = smov [#allocation6]  }
  0x12   :  { %s46_s22 = sshll.u32 %s449_s8, 4  ;;  %s47_s22 = int_to_ptr.vmem [resolvable:$true] %s46_s22 }
  0x13   :  { %s408_s23 = scalar_lea.vmem %s47_s22, 512  ;;  %p413_p6 = scmp.lt.s32.totalorder %s47_s22, %s47_s22 }
  0x14   :  { %p409_p5 = scmp.ne.s32.totalorder %s47_s22, %s408_s23  ;;  %p414_p7 = scmp.lt.s32.totalorder %s408_s23, %s408_s23 }
  0x16   :  { %p415_p8 = por %p414_p7, %p413_p6 }
  0x18   :  { %p416_p9 = pnand %p415_p8, %p409_p5 }
  0x1a   :  { %419 = shalt.err (!%p416_p9)
}
  0x1b   :  { %s450_s24 = smov 128   ;;  %s451_s25 = smov 8  }
  0x1c   :  { %52 = dma.hbm_to_vmem [thread:$0]  %s552_s5, 512, %s47_s22, [#allocation7], %s450_s24, %s450_s24, %s451_s25  }
  0x1d   :  { %440 = dma.done.wait [#allocation4], 256  }
  0x1e   :  { %441 = vsyncadd [#allocation4], 4294967040 }
  0x1f   :  { %442 = dma.done.wait [#allocation7], 512  }
  0x20   :  { %443 = vsyncadd [#allocation7], 4294966784  ;;  %v452_v1 = vmov 0.0   ;;  %vm453_vm0 = vmmov 0   ;;  %vm79_vm1 = vcmask 1041408   ;;  %vm75_vm2 = vcmask 31744  }
  0x21   :  { %348 = vmatprep.subr.bf16.mxu0 %v452_v1  ;;  %350 = vmatprep.mubr.msk.bf16.mxu0 %vm453_vm0, %v452_v1  ;;  %v67_v2 = vld [vmem:[%s548_s1] sm:$0x3]  ;;  %v372_v5 = vld [vmem:[#allocation3 + $0x8] sm:$0xff]   ;;  %vm148_vm3 = vcmask 261120   ;;  %v377_v18 = vld [vmem:[#allocation6] ss:$8 sps:$4 sm:$0xff]   ;;  %v222_v35 = vlaneseq }
  0x22   :  { %354 = vmatprep.subr.bf16.mxu1 %v452_v1  ;;  %358 = vmatprep.mubr.msk.bf16.mxu1 %vm453_vm0, %v452_v1  ;;  %v66_v3 = vld [vmem:[%s547_s0] sm:$0xf]  ;;  %v81_v4 = vsel %vm79_vm1, %v67_v2, 0  ;;  %v376_v8 = vld [vmem:[#allocation6 + $0x14] ss:$8 sps:$4 sm:$0xff]   ;;  %v454_v19 = vmov 0  }
  0x23   :  { %349 = vmatpush3.bf16.msra.mxu0 %v81_v4  ;;  %355 = vmatpush3.bf16.msra.mxu1 %v372_v5  ;;  %v373_v6 = vld [vmem:[#allocation3] sm:$0xff]   ;;  %v328_v9 = vld [vmem:[%s549_s2] ss:$0 sm:$0xff]  ;;  %vm213_vm4 = vcmask 3072   ;;  %v223_v36 = vshrl.u32 %v222_v35, 7  ;;  %vm304_vm5 = vcmask 1043456  }
  0x24   :  { %356 = vmatprep.subr.bf16.mxu1 %v452_v1  ;;  %v374_v7 = vld [vmem:[#allocation6 + $0x10] ss:$8 sps:$4 sm:$0xff]   ;;  %267 = vmatprep.subr.bf16.mxu0 %v376_v8  ;;  %v379_v17 = vld [vmem:[#allocation6 + $0x4] ss:$8 sps:$4 sm:$0xff]   ;;  %vm305_vm6 = vcmask 834564   ;;  %s455_s15 = smov [#allocation8]  }
  0x25   :  { %v330_v20 = vld [vmem:[%s551_s4] ss:$0 sm:$0xff]  ;;  %v224_v37 = vsub.s32 0, %v223_v36  ;;  %v228_v38 = vsub.s32 1, %v223_v36  ;;  %s316_s16 = sshll.u32 %s455_s15, 4  ;;  %vm306_vm7 = vmor %vm305_vm6, %vm304_vm5  ;;  %s317_s16 = int_to_ptr.vmem [resolvable:$true] %s316_s16 }
  0x26   :  { %351 = vmatmul.mubr.msk.bf16.vlgmr.msra.gmra.mxu0 %vm75_vm2, %v66_v3  ;;  %v334_v24 = vld [vmem:[%s554_s7] ss:$0 sm:$0xff]  ;;  %p425_p11 = scmp.lt.s32.totalorder %s317_s16, %s317_s16 }
  0x27   :  { %357 = vmatpush3.bf16.msra.mxu1 %v373_v6  ;;  %268 = vmatpush1.bf16.msra.mxu0 %v374_v7  ;;  %v335_v31 = vld [vmem:[#allocation2] ss:$0 sm:$0xff] }
  0x28   :  { %269 = vmatprep.subr.bf16.mxu0 %v379_v17  ;;  %287 = vmatprep.mubr.bf16.mxu0 %v454_v19  ;;  %v220_v39 = vld [vmem:[%s553_s6] sm:$0x3] }
  0x29   :  { %v225_v40 = vrot.slane %v220_v39, %v224_v37  ;;  %v229_v41 = vrot.slane %v220_v39, %v228_v38 }
  0x2b   :  { %270 = vmatpush1.bf16.msra.mxu0 %v377_v18 }
  0xe6   :  { %v117_v10 = vpop.f32.mrf.mxu0 }
  0xe7   :  { %v118_v11 = vadd.f32 %v328_v9, %v117_v10 }
  0xe8   :  { %v352_v12 = vpop.f32.mrf.mxu0 }
  0xe9   :  { %v123_v13 = vmax.f32 %v118_v11, 0.0 }
  0xea   :  { %v120_v14 = vpop.f32.mrf.mxu0 }
  0xeb   :  { %v124_v15 = vpack.c.bf16 %v123_v13, %v123_v13 }
  0xec   :  { %v353_v16 = vpop.f32.mrf.mxu0 }
  0xed   :  { %359 = vmatmul.mubr.msk.bf16.vlgmr.msra.gmra.mxu1 %vm148_vm3, %v124_v15 }
 0x1ad   :  { %v186_v21 = vpop.f32.mrf.mxu1 }
 0x1ae   :  { %v187_v22 = vadd.f32 %v330_v20, %v186_v21 }
 0x1af   :  { %v360_v23 = vpop.f32.mrf.mxu1 }
 0x1b0   :  { %v192_v25 = vmax.f32 %v187_v22, 0.0 }
 0x1b1   :  { %v189_v26 = vpop.f32.mrf.mxu1 }
 0x1b2   :  { %v215_v27 = vpack.c.bf16 %v192_v25, %v192_v25  ;;  %v200_v28 = vmul.f32 %v334_v24, %v192_v25 }
 0x1b3   :  { %v361_v29 = vpop.f32.mrf.mxu1 }
 0x1b4   :  { %340 = vmatmul.mubr.msk.bf16.vlgmr.msra.gmra.mxu0 %vm148_vm3, %v215_v27  ;;  %v201_v30 = vsel %vm148_vm3, %v200_v28, 0.0 }
 0x1b5   :  { %202 = vadd.xlane.f32.xlu0 %v201_v30 }
 0x23e   :  { %v203_v32 = vpop.xlane.xlu0 %202 }
 0x23f   :  { %v211_v33 = vadd.f32 %v335_v31, %v203_v32 }
 0x241   :  { %v212_v34 = vpack.c.bf16 %v211_v33, %v211_v33 }
 0x243   :  { %214 = vst.msk [vmem:[%s556_s9] sm:$0xf] %vm213_vm4, %v212_v34  ;;  %s420_s9 = scalar_lea.vmem %s317_s16, 128 }
 0x244   :  { %p421_p10 = scmp.ne.s32.totalorder %s317_s16, %s420_s9  ;;  %p426_p12 = scmp.lt.s32.totalorder %s420_s9, %s420_s9 }
 0x246   :  { %p427_p13 = por %p426_p12, %p425_p11 }
 0x248   :  { %p428_p0 = pnand %p427_p13, %p421_p10 }
 0x274   :  { %v289_v42 = vpop.f32.mrf.mxu0 }
 0x275   :  { %v290_v44 = vadd.f32 %v289_v42, %v225_v40 }
 0x276   :  { %v291_v43 = vpop.f32.mrf.mxu0 }
 0x277   :  { %v292_v45 = vadd.f32 %v291_v43, %v229_v41 }
 0x278   :  { %v293_v46 = vpop.f32.mrf.mxu0 }
 0x279   :  { %v342_v47 = vpack.c.bf16 %v292_v45, %v290_v44 }
 0x27a   :  { %v294_v48 = vpop.f32.mrf.mxu0 }
 0x27b   :  { %307 = vst.msk [vmem:[#allocation8] sm:$0xff] %vm306_vm7, %v342_v47 }
 0x27c   :  { %431 = shalt.err (!%p428_p0)
}
 0x27d   :  { %319 = dma.vmem_to_hbm [thread:$0]  %s317_s16, 128, %s557_s10, [#allocation5]  }
 0x27e   :  { %444 = dma.done.wait [#allocation5], 128  }
 0x27f   :  { %445 = vsyncadd [#allocation5], 4294967168 }
 0x280   :  { %325 = vsyncpa [#allocation4], 1 }
 0x281   :  { %326 = vsyncpa [#allocation7], 1 }
 0x282   :  { %327 = vsyncpa [#allocation5], 1 }

</bundles_post_ra>
